<compile_context>
chip_gen: v5e
topology: v5e:2x2
jax: 0.10.0
libtpu: 0.0.40
codegen_flags: <defaults>
</compile_context>

<pallas_src>
import jax
import jax.numpy as jnp
from jax.experimental import pallas as pl
from jax.experimental.pallas import tpu as pltpu


def xornet_kernel(params_ref, x_ref, o_ref):
    # params_ref: SMEM f32[16] -> [w1_00, w1_01, w1_10, w1_11, b1_0, b1_1,
    #                              w2_0, w2_1, b2, pad...]
    # x_ref:      VMEM [2, tr, pC]  (feature-major slab; batch dense in (tr, pC))
    # o_ref:      VMEM [tr, pC]     (sublane+lane dense output slab)
    x0 = x_ref[0]          # [tr, pC]
    x1 = x_ref[1]          # [tr, pC]

    w1_00 = params_ref[0]
    w1_01 = params_ref[1]
    w1_10 = params_ref[2]
    w1_11 = params_ref[3]
    b1_0 = params_ref[4]
    b1_1 = params_ref[5]
    w2_0 = params_ref[6]
    w2_1 = params_ref[7]
    b2_0 = params_ref[8]

    def sigmoid(z):
        # One EUP push (tanh) instead of exp + divide.
        return 0.5 * jnp.tanh(0.5 * z) + 0.5

    # Layer 1: two scalar-broadcast FMAs per hidden unit + sigmoid (EUP).
    h0 = sigmoid(x0 * w1_00 + x1 * w1_01 + b1_0)
    h1 = sigmoid(x0 * w1_10 + x1 * w1_11 + b1_1)
    # Layer 2.
    y = sigmoid(h0 * w2_0 + h1 * w2_1 + b2_0)
    o_ref[...] = y.astype(o_ref.dtype)


def _choose_slab(B, *, lanes=512, tr_cap=1024):
    """Pick a [pR, pC] batch slab and a row-tile tr with tr | pR."""
    pC = lanes                                  # lane-dense, multiple of 128
    rows = pl.cdiv(B, pC)
    pR = max(8, pl.cdiv(rows, 8) * 8)           # sublane multiple of 8
    tr = min(tr_cap, pR)                        # rows per grid step (VMEM-bounded)
    if tr == pR and pR >= 16:
        # Prefer >=2 grid steps so v7x's two TensorCores both get work.
        tr = max(8, (pR // 16) * 8)
    pR = pl.cdiv(pR, tr) * tr                   # ensure tr divides pR
    return pR, pC, tr


def xornet_forward(x, w1, b1, w2, b2):
    """x: [B, 2]; w1: [2, 2]; b1: [2]; w2: [1, 2]; b2: [1]  ->  [B, 1]."""
    B = x.shape[0]
    dtype = x.dtype

    # Pack all 9 parameters into one SMEM-resident f32[16] array.
    params = jnp.concatenate([
        w1.reshape(-1), b1.reshape(-1), w2.reshape(-1), b2.reshape(-1),
        jnp.zeros((7,), jnp.float32),
    ]).astype(jnp.float32)

    pR, pC, tr = _choose_slab(B)
    # Fused pad + transpose into the dense slab (single wrapper-side HBM pass).
    x_slab = (jnp.zeros((2, pR * pC), dtype)
              .at[:, :B].set(x.T)
              .reshape(2, pR, pC))

    # Tile bytes: (2 + 1) * tr * pC * 4, double-buffered; at tr=1024, pC=512
    # this is ~12 MiB total — well inside v7x's 32 MiB scoped / 64 MiB physical.
    vmem_limit = 32 * 1024 * 1024

    out = pl.pallas_call(
        xornet_kernel,
        out_shape=jax.ShapeDtypeStruct((pR, pC), dtype),
        grid_spec=pltpu.PrefetchScalarGridSpec(
            num_scalar_prefetch=0,
            grid=(pR // tr,),
            in_specs=[
                pl.BlockSpec(memory_space=pltpu.MemorySpace.SMEM),  # packed params
                pl.BlockSpec((2, tr, pC), lambda i: (0, i, 0)),     # x slab tile
            ],
            out_specs=pl.BlockSpec((tr, pC), lambda i: (i, 0)),
        ),
        compiler_params=pltpu.CompilerParams(
            dimension_semantics=("parallel",),
            vmem_limit_bytes=vmem_limit),
    )(params, x_slab)
    return out.reshape(pR * pC)[:B].reshape(B, 1)


def reference_forward(x, w1, b1, w2, b2):
    h = jax.nn.sigmoid(x @ w1.T + b1)
    return jax.nn.sigmoid(h @ w2.T + b2)


if __name__ == "__main__":
    key = jax.random.PRNGKey(0)
    k_x, k_w1, k_b1, k_w2, k_b2, k_x2 = jax.random.split(key, 6)

    # PyTorch nn.Linear shapes: weight [out, in], bias [out]; U(-1/sqrt(fan_in), ...) init.
    bound1 = 1.0 / jnp.sqrt(2.0)
    w1 = jax.random.uniform(k_w1, (2, 2), minval=-bound1, maxval=bound1, dtype=jnp.float32)
    b1 = jax.random.uniform(k_b1, (2,), minval=-bound1, maxval=bound1, dtype=jnp.float32)
    w2 = jax.random.uniform(k_w2, (1, 2), minval=-bound1, maxval=bound1, dtype=jnp.float32)
    b2 = jax.random.uniform(k_b2, (1,), minval=-bound1, maxval=bound1, dtype=jnp.float32)

    # Small batch (the literal XOR use case).
    B = 8
    x = jax.random.uniform(k_x, (B, 2), dtype=jnp.float32)
    out = jax.block_until_ready(xornet_forward(x, w1, b1, w2, b2))
    ref = reference_forward(x, w1, b1, w2, b2)
    assert out.shape == (B, 1), out.shape
    assert jnp.allclose(out, ref, atol=1e-5, rtol=1e-5), (out, ref)

    # Larger, non-slab-aligned batch: exercises padding + the row grid.
    B2 = 2500
    x2 = jax.random.uniform(k_x2, (B2, 2), dtype=jnp.float32)
    out2 = jax.block_until_ready(xornet_forward(x2, w1, b1, w2, b2))
    ref2 = reference_forward(x2, w1, b1, w2, b2)
    assert out2.shape == (B2, 1), out2.shape
    assert jnp.allclose(out2, ref2, atol=1e-5, rtol=1e-5)

    print("KERNEL_OK")
</pallas_src>

<mosaic_0001>
module attributes {stable_mosaic.version = 11 : i64} {
  func.func @xornet_kernel(%arg0: i32, %arg1: memref<16xf32, #tpu.memory_space<smem>>, %arg2: memref<2x8x512xf32, #tpu.memory_space<vmem>>, %arg3: memref<8x512xf32, #tpu.memory_space<vmem>>) attributes {dimension_semantics = [#tpu.dimension_semantics<parallel>], iteration_bounds = array<i64: 1>, scalar_prefetch = 0 : i64, scratch_operands = 0 : i64, tpu.core_type = #tpu.core_type<tc>, window_params = [{transform_indices = @transform_0, window_bounds = array<i64: 16>}, {transform_indices = @transform_1, window_bounds = array<i64: 2, 8, 512>}, {transform_indices = @transform_2, window_bounds = array<i64: 8, 512>}]} {
    %c0 = arith.constant 0 : index
    %c0_0 = arith.constant 0 : index
    %c0_1 = arith.constant 0 : index
    %0 = vector.load %arg2[%c0, %c0_0, %c0_1] : memref<2x8x512xf32, #tpu.memory_space<vmem>>, vector<1x8x512xf32>
    %1 = vector.shape_cast %0 : vector<1x8x512xf32> to vector<8x512xf32>
    %c1 = arith.constant 1 : index
    %c0_2 = arith.constant 0 : index
    %c0_3 = arith.constant 0 : index
    %2 = vector.load %arg2[%c1, %c0_2, %c0_3] : memref<2x8x512xf32, #tpu.memory_space<vmem>>, vector<1x8x512xf32>
    %3 = vector.shape_cast %2 : vector<1x8x512xf32> to vector<8x512xf32>
    %c0_4 = arith.constant 0 : index
    %4 = memref.load %arg1[%c0_4] : memref<16xf32, #tpu.memory_space<smem>>
    %c1_5 = arith.constant 1 : index
    %5 = memref.load %arg1[%c1_5] : memref<16xf32, #tpu.memory_space<smem>>
    %c2 = arith.constant 2 : index
    %6 = memref.load %arg1[%c2] : memref<16xf32, #tpu.memory_space<smem>>
    %c3 = arith.constant 3 : index
    %7 = memref.load %arg1[%c3] : memref<16xf32, #tpu.memory_space<smem>>
    %c4 = arith.constant 4 : index
    %8 = memref.load %arg1[%c4] : memref<16xf32, #tpu.memory_space<smem>>
    %c5 = arith.constant 5 : index
    %9 = memref.load %arg1[%c5] : memref<16xf32, #tpu.memory_space<smem>>
    %c6 = arith.constant 6 : index
    %10 = memref.load %arg1[%c6] : memref<16xf32, #tpu.memory_space<smem>>
    %c7 = arith.constant 7 : index
    %11 = memref.load %arg1[%c7] : memref<16xf32, #tpu.memory_space<smem>>
    %c8 = arith.constant 8 : index
    %12 = memref.load %arg1[%c8] : memref<16xf32, #tpu.memory_space<smem>>
    %13 = vector.broadcast %4 : f32 to vector<8x512xf32>
    %14 = arith.mulf %1, %13 : vector<8x512xf32>
    %15 = vector.broadcast %5 : f32 to vector<8x512xf32>
    %16 = arith.mulf %3, %15 : vector<8x512xf32>
    %17 = arith.addf %14, %16 : vector<8x512xf32>
    %18 = vector.broadcast %8 : f32 to vector<8x512xf32>
    %19 = arith.addf %17, %18 : vector<8x512xf32>
    %cst = arith.constant 5.000000e-01 : f32
    %20 = vector.broadcast %cst : f32 to vector<8x512xf32>
    %21 = arith.mulf %20, %19 : vector<8x512xf32>
    %22 = math.tanh %21 : vector<8x512xf32>
    %cst_6 = arith.constant 5.000000e-01 : f32
    %23 = vector.broadcast %cst_6 : f32 to vector<8x512xf32>
    %24 = arith.mulf %23, %22 : vector<8x512xf32>
    %cst_7 = arith.constant 5.000000e-01 : f32
    %25 = vector.broadcast %cst_7 : f32 to vector<8x512xf32>
    %26 = arith.addf %24, %25 : vector<8x512xf32>
    %27 = vector.broadcast %6 : f32 to vector<8x512xf32>
    %28 = arith.mulf %1, %27 : vector<8x512xf32>
    %29 = vector.broadcast %7 : f32 to vector<8x512xf32>
    %30 = arith.mulf %3, %29 : vector<8x512xf32>
    %31 = arith.addf %28, %30 : vector<8x512xf32>
    %32 = vector.broadcast %9 : f32 to vector<8x512xf32>
    %33 = arith.addf %31, %32 : vector<8x512xf32>
    %cst_8 = arith.constant 5.000000e-01 : f32
    %34 = vector.broadcast %cst_8 : f32 to vector<8x512xf32>
    %35 = arith.mulf %34, %33 : vector<8x512xf32>
    %36 = math.tanh %35 : vector<8x512xf32>
    %cst_9 = arith.constant 5.000000e-01 : f32
    %37 = vector.broadcast %cst_9 : f32 to vector<8x512xf32>
    %38 = arith.mulf %37, %36 : vector<8x512xf32>
    %cst_10 = arith.constant 5.000000e-01 : f32
    %39 = vector.broadcast %cst_10 : f32 to vector<8x512xf32>
    %40 = arith.addf %38, %39 : vector<8x512xf32>
    %41 = vector.broadcast %10 : f32 to vector<8x512xf32>
    %42 = arith.mulf %26, %41 : vector<8x512xf32>
    %43 = vector.broadcast %11 : f32 to vector<8x512xf32>
    %44 = arith.mulf %40, %43 : vector<8x512xf32>
    %45 = arith.addf %42, %44 : vector<8x512xf32>
    %46 = vector.broadcast %12 : f32 to vector<8x512xf32>
    %47 = arith.addf %45, %46 : vector<8x512xf32>
    %cst_11 = arith.constant 5.000000e-01 : f32
    %48 = vector.broadcast %cst_11 : f32 to vector<8x512xf32>
    %49 = arith.mulf %48, %47 : vector<8x512xf32>
    %50 = math.tanh %49 : vector<8x512xf32>
    %cst_12 = arith.constant 5.000000e-01 : f32
    %51 = vector.broadcast %cst_12 : f32 to vector<8x512xf32>
    %52 = arith.mulf %51, %50 : vector<8x512xf32>
    %cst_13 = arith.constant 5.000000e-01 : f32
    %53 = vector.broadcast %cst_13 : f32 to vector<8x512xf32>
    %54 = arith.addf %52, %53 : vector<8x512xf32>
    %c0_14 = arith.constant 0 : index
    %c0_15 = arith.constant 0 : index
    %55 = vector.load %arg3[%c0_14, %c0_15] : memref<8x512xf32, #tpu.memory_space<vmem>>, vector<8x512xf32>
    tpu.vector_store %arg3[%c0_14, %c0_15], %54 {strides = array<i32>} : memref<8x512xf32, #tpu.memory_space<vmem>>, vector<8x512xf32>,
    return
  }
  func.func @transform_0(%arg0: i32) -> i32 {
    %c0_i32 = arith.constant 0 : i32
    %c0_i32_0 = arith.constant 0 : i32
    return %c0_i32 : i32
  }
  func.func @transform_1(%arg0: i32) -> (i32, i32, i32) {
    %c0_i32 = arith.constant 0 : i32
    %c0_i32_0 = arith.constant 0 : i32
    %c0_i32_1 = arith.constant 0 : i32
    return %c0_i32, %arg0, %c0_i32_0 : i32, i32, i32
  }
  func.func @transform_2(%arg0: i32) -> (i32, i32) {
    %c0_i32 = arith.constant 0 : i32
    %c0_i32_0 = arith.constant 0 : i32
    return %arg0, %c0_i32 : i32, i32
  }
}

</mosaic_0001>

<bundles_post_ra>
// kernel: tpu_custom_call.1
= control target key start
LH: loop header
LB: loop body
LE: loop exit
PB: predicated region body
PF: predicated region fallthrough
CT: control target
= control target key end

     0   :  { %7 = vsyncpa [#allocation5], 0  ;;  %s318_s0 = inlined_call_operand.hbm [shape: f32[16], index: 0, kind: input, shape index: {}]   ;;  %s319_s1 = inlined_call_operand.hbm [shape: f32[2,8,512], index: 1, kind: input, shape index: {}]   ;;  %s320_s2 = inlined_call_operand.hbm [shape: f32[8,512], index: 2, kind: output, shape index: {}]  }
   0x1   :  { %8 = vsyncpa [#allocation3], 0 }
   0x2   :  { %9 = vsyncpa [#allocation4], 0  ;;  %s15_s11 = sshll.u32 %s318_s0, 4  ;;  %s23_s14 = sshll.u32 %s319_s1, 4  ;;  %s16_s11 = int_to_ptr.hbm [resolvable:$true] %s15_s11  ;;  %s24_s14 = int_to_ptr.hbm [resolvable:$true] %s23_s14 }
   0x3   :  { %s289_s15 = smov [#allocation2]   ;;  %s290_s16 = smov [#allocation6]  }
   0x4   :  { %18 = dma.hbm_to_smem %s16_s11, 16, %s289_s15, [#allocation5]  }
   0x5   :  { %s25_s17 = sshll.u32 %s290_s16, 4  ;;  %s291_s18 = smov 512   ;;  %s26_s17 = int_to_ptr.vmem [resolvable:$true] %s25_s17 }
   0x6   :  { %s292_s19 = smov 32  }
   0x7   :  { %31 = dma.hbm_to_vmem [thread:$0]  %s24_s14, 1024, %s26_s17, [#allocation3], %s291_s18, %s291_s18, %s292_s19  }
   0x8   :  { %283 = dma.done.wait [#allocation5], 16  }
   0x9   :  { %284 = vsyncadd [#allocation5], 4294967280 }
   0xa   :  { %285 = dma.done.wait [#allocation3], 1024  }
   0xb   :  { %286 = vsyncadd [#allocation3], 4294966272 }
   0xc   :  { %40 = sfence }
   0xd   :  { %s50_s0 = sld [smem:[#allocation2]]  ;;  %v41_v0 = vld [vmem:[#allocation6] sm:$0xff]  ;;  %v42_v1 = vld [vmem:[#allocation6 + $0x8] sm:$0xff]  ;;  %v43_v2 = vld [vmem:[#allocation6 + $0x10] sm:$0xff]  ;;  %s293_s27 = smov [#allocation7]  }
   0xe   :  { %s186_s20 = sld [smem:[#allocation2 + $0x1]]  ;;  %v46_v3 = vld [vmem:[#allocation6 + $0x20] sm:$0xff]  ;;  %v47_v4 = vld [vmem:[#allocation6 + $0x28] sm:$0xff]  ;;  %v48_v5 = vld [vmem:[#allocation6 + $0x30] sm:$0xff]  ;;  %s173_s28 = sshll.u32 %s293_s27, 4  ;;  %s174_s28 = int_to_ptr.vmem [resolvable:$true] %s173_s28 }
   0xf   :  { %s187_s21 = sld [smem:[#allocation2 + $0x2]]  ;;  %v44_v30 = vld [vmem:[#allocation6 + $0x18] sm:$0xff]  ;;  %s175_s3 = sshll.u32 %s320_s2, 4  ;;  %s176_s3 = int_to_ptr.hbm [resolvable:$true] %s175_s3 }
  0x10   :  { %s188_s22 = sld [smem:[#allocation2 + $0x3]]  ;;  %v49_v34 = vld [vmem:[#allocation6 + $0x38] sm:$0xff] }
  0x11   :  { %s189_s1 = sld [smem:[#allocation2 + $0x4]] }
  0x12   :  { %s190_s23 = sld [smem:[#allocation2 + $0x5]] }
  0x13   :  { %v59_v6 = vstv %s50_s0  ;;  %s191_s24 = sld [smem:[#allocation2 + $0x6]] }
  0x14   :  { %v60_v7 = vmul.f32 %v59_v6, %v41_v0  ;;  %v64_v8 = vstv %s186_s20  ;;  %v61_v9 = vmul.f32 %v59_v6, %v42_v1  ;;  %v62_v10 = vmul.f32 %v59_v6, %v43_v2  ;;  %s192_s25 = sld [smem:[#allocation2 + $0x7]] }
  0x15   :  { %v65_v11 = vmul.f32 %v64_v8, %v46_v3  ;;  %v94_v12 = vstv %s187_s21  ;;  %v66_v13 = vmul.f32 %v64_v8, %v47_v4  ;;  %v67_v14 = vmul.f32 %v64_v8, %v48_v5  ;;  %s193_s26 = sld [smem:[#allocation2 + $0x8]] }
  0x16   :  { %v95_v15 = vmul.f32 %v94_v12, %v41_v0  ;;  %v99_v16 = vstv %s188_s22  ;;  %v96_v17 = vmul.f32 %v94_v12, %v42_v1  ;;  %v97_v18 = vmul.f32 %v94_v12, %v43_v2 }
  0x17   :  { %v69_v19 = vadd.f32 %v65_v11, %v60_v7  ;;  %v73_v20 = vstv %s189_s1  ;;  %v100_v21 = vmul.f32 %v99_v16, %v46_v3  ;;  %v70_v22 = vadd.f32 %v66_v13, %v61_v9 }
  0x18   :  { %v108_v23 = vstv %s190_s23  ;;  %v101_v24 = vmul.f32 %v99_v16, %v47_v4  ;;  %v71_v25 = vadd.f32 %v67_v14, %v62_v10  ;;  %v102_v26 = vmul.f32 %v99_v16, %v48_v5 }
  0x19   :  { %v74_v27 = vadd.f32 %v73_v20, %v69_v19  ;;  %v104_v28 = vadd.f32 %v100_v21, %v95_v15  ;;  %v75_v29 = vadd.f32 %v73_v20, %v70_v22  ;;  %v63_v41 = vmul.f32 %v59_v6, %v44_v30 }
  0x1a   :  { %v105_v31 = vadd.f32 %v101_v24, %v96_v17  ;;  %v76_v32 = vadd.f32 %v73_v20, %v71_v25  ;;  %v106_v33 = vadd.f32 %v102_v26, %v97_v18  ;;  %v68_v43 = vmul.f32 %v64_v8, %v49_v34 }
  0x1b   :  { %v78_v35 = vmul.f32 0.5, %v74_v27  ;;  %v109_v36 = vadd.f32 %v108_v23, %v104_v28  ;;  %v79_v37 = vmul.f32 0.5, %v75_v29  ;;  %v98_v44 = vmul.f32 %v94_v12, %v44_v30 }
  0x1c   :  { %v110_v38 = vadd.f32 %v108_v23, %v105_v31  ;;  %v80_v39 = vmul.f32 0.5, %v76_v32  ;;  %v111_v40 = vadd.f32 %v108_v23, %v106_v33  ;;  %v103_v47 = vmul.f32 %v99_v16, %v49_v34 }
  0x1d   :  { %199 = vtanh.f32 %v78_v35  ;;  %v113_v42 = vmul.f32 0.5, %v109_v36  ;;  %v72_v48 = vadd.f32 %v68_v43, %v63_v41  ;;  %v129_v58 = vstv %s191_s24 }
  0x1e   :  { %201 = vtanh.f32 %v79_v37  ;;  %v114_v45 = vmul.f32 0.5, %v110_v38  ;;  %v115_v46 = vmul.f32 0.5, %v111_v40  ;;  %v107_v49 = vadd.f32 %v103_v47, %v98_v44 }
  0x1f   :  { %203 = vtanh.f32 %v113_v42  ;;  %v77_v50 = vadd.f32 %v73_v20, %v72_v48  ;;  %v134_v0 = vstv %s192_s25  ;;  %v143_v13 = vstv %s193_s26 }
  0x20   :  { %205 = vtanh.f32 %v114_v45  ;;  %v112_v51 = vadd.f32 %v108_v23, %v107_v49 }
  0x21   :  { %207 = vtanh.f32 %v80_v39  ;;  %v81_v53 = vmul.f32 0.5, %v77_v50 }
  0x22   :  { %209 = vtanh.f32 %v115_v46  ;;  %v116_v56 = vmul.f32 0.5, %v112_v51 }
  0x23   :  { %v200_v52 = vpop.eup %199  ;;  %211 = vtanh.f32 %v81_v53 }
  0x24   :  { %v202_v54 = vpop.eup %201  ;;  %v86_v55 = vmul.f32 0.5, %v200_v52  ;;  %213 = vtanh.f32 %v116_v56 }
  0x25   :  { %v204_v57 = vpop.eup %203  ;;  %v87_v59 = vmul.f32 0.5, %v202_v54 }
  0x26   :  { %v206_v60 = vpop.eup %205  ;;  %v90_v61 = vadd.f32 0.5, %v86_v55  ;;  %v121_v62 = vmul.f32 0.5, %v204_v57 }
  0x27   :  { %v208_v63 = vpop.eup %207  ;;  %v91_v1 = vadd.f32 0.5, %v87_v59  ;;  %v122_v2 = vmul.f32 0.5, %v206_v60 }
  0x28   :  { %v210_v3 = vpop.eup %209  ;;  %v125_v4 = vadd.f32 0.5, %v121_v62  ;;  %v130_v5 = vmul.f32 %v129_v58, %v90_v61  ;;  %v88_v6 = vmul.f32 0.5, %v208_v63 }
  0x29   :  { %v126_v7 = vadd.f32 0.5, %v122_v2  ;;  %v131_v8 = vmul.f32 %v129_v58, %v91_v1  ;;  %v123_v9 = vmul.f32 0.5, %v210_v3  ;;  %v212_v12 = vpop.eup %211 }
  0x2a   :  { %v135_v10 = vmul.f32 %v134_v0, %v125_v4  ;;  %v92_v11 = vadd.f32 0.5, %v88_v6  ;;  %v214_v16 = vpop.eup %213  ;;  %v89_v19 = vmul.f32 0.5, %v212_v12 }
  0x2b   :  { %v136_v14 = vmul.f32 %v134_v0, %v126_v7  ;;  %v127_v15 = vadd.f32 0.5, %v123_v9  ;;  %v124_v22 = vmul.f32 0.5, %v214_v16 }
  0x2c   :  { %v139_v17 = vadd.f32 %v135_v10, %v130_v5  ;;  %v132_v18 = vmul.f32 %v129_v58, %v92_v11  ;;  %v93_v24 = vadd.f32 0.5, %v89_v19 }
  0x2d   :  { %v140_v20 = vadd.f32 %v136_v14, %v131_v8  ;;  %v137_v21 = vmul.f32 %v134_v0, %v127_v15  ;;  %v128_v27 = vadd.f32 0.5, %v124_v22 }
  0x2e   :  { %v144_v23 = vadd.f32 %v143_v13, %v139_v17  ;;  %v133_v29 = vmul.f32 %v129_v58, %v93_v24 }
  0x2f   :  { %v145_v25 = vadd.f32 %v143_v13, %v140_v20  ;;  %v141_v26 = vadd.f32 %v137_v21, %v132_v18  ;;  %v138_v32 = vmul.f32 %v134_v0, %v128_v27 }
  0x30   :  { %v148_v28 = vmul.f32 0.5, %v144_v23 }
  0x31   :  { %v149_v30 = vmul.f32 0.5, %v145_v25  ;;  %v146_v31 = vadd.f32 %v143_v13, %v141_v26  ;;  %v142_v34 = vadd.f32 %v138_v32, %v133_v29 }
  0x32   :  { %215 = vtanh.f32 %v148_v28 }
  0x33   :  { %217 = vtanh.f32 %v149_v30  ;;  %v150_v33 = vmul.f32 0.5, %v146_v31  ;;  %v147_v35 = vadd.f32 %v143_v13, %v142_v34 }
  0x35   :  { %219 = vtanh.f32 %v150_v33  ;;  %v151_v36 = vmul.f32 0.5, %v147_v35 }
  0x37   :  { %221 = vtanh.f32 %v151_v36 }
  0x38   :  { %v216_v37 = vpop.eup %215 }
  0x39   :  { %v218_v38 = vpop.eup %217  ;;  %v156_v39 = vmul.f32 0.5, %v216_v37 }
  0x3a   :  { %v157_v40 = vmul.f32 0.5, %v218_v38 }
  0x3b   :  { %v220_v41 = vpop.eup %219  ;;  %v160_v42 = vadd.f32 0.5, %v156_v39 }
  0x3c   :  { %v161_v43 = vadd.f32 0.5, %v157_v40  ;;  %v158_v44 = vmul.f32 0.5, %v220_v41 }
  0x3d   :  { %164 = vst [vmem:[#allocation7] sm:$0xff] %v160_v42  ;;  %v222_v46 = vpop.eup %221 }
  0x3e   :  { %165 = vst [vmem:[#allocation7 + $0x8] sm:$0xff] %v161_v43  ;;  %v162_v45 = vadd.f32 0.5, %v158_v44  ;;  %v159_v47 = vmul.f32 0.5, %v222_v46 }
  0x40   :  { %166 = vst [vmem:[#allocation7 + $0x10] sm:$0xff] %v162_v45  ;;  %v163_v48 = vadd.f32 0.5, %v159_v47 }
  0x42   :  { %167 = vst [vmem:[#allocation7 + $0x18] sm:$0xff] %v163_v48 }
  0x43   :  { %178 = dma.vmem_to_hbm [thread:$0]  %s174_s28, 512, %s176_s3, [#allocation4]  }
  0x44   :  { %287 = dma.done.wait [#allocation4], 512  }
  0x45   :  { %288 = vsyncadd [#allocation4], 4294966784 }
  0x46   :  { %183 = vsyncpa [#allocation3], 1 }
  0x47   :  { %184 = vsyncpa [#allocation4], 1 }
  0x48   :  { %185 = vsyncpa [#allocation5], 1 }

</bundles_post_ra>
